<compile_context>
chip_gen: v6e
topology: v6e:2x2x1
jax: 0.10.0
libtpu: 0.0.40
codegen_flags: <defaults>
</compile_context>

<pallas_src>
import functools

import jax
import jax.numpy as jnp
from jax import lax
from jax.experimental import pallas as pl
from jax.experimental.pallas import tpu as pltpu


def _round_up(x, m):
    return ((x + m - 1) // m) * m


def resnet_orig_kernel(x_ref, w0_ref, b0_ref, wb_ref, bb_ref, wl_ref, bl_ref,
                       out_ref, h_ref, h2_ref, *, blocks_per_step):
    """One grid step = `blocks_per_step` residual blocks for one batch tile.

    Kernel-visible shapes:
      x:  (bm, D_in) f32          w0: (D_in, H) wdt       b0: (1, H) f32
      wb: (2*bps, H, H) wdt       bb: (2*bps, 1, H) f32
      wl: (H, D_out_p) wdt        bl: (1, D_out_p) f32
      out: (bm, D_out_p) f32      h, h2 (scratch): (bm, H) f32
    """
    i = pl.program_id(1)
    n_steps = pl.num_programs(1)

    def mm(a_f32, w):
        # Cast activation to the weight dtype (bf16 weights -> bf16 MXU path,
        # f32 weights -> exact f32 math); always accumulate in f32.
        return jnp.dot(a_f32.astype(w.dtype), w, preferred_element_type=jnp.float32)

    # fc0 + activation0 (first block step of each batch tile only).
    @pl.when(i == 0)
    def _():
        h_ref[...] = jnp.maximum(mm(x_ref[...], w0_ref[...]) + b0_ref[...], 0.0)

    # Residual blocks handled by this step.  The residual (old h) stays in
    # h_ref (not in vregs); the intermediate goes through the h2 scratch.
    def block_body(j, carry):
        h1 = jnp.maximum(mm(h_ref[...], wb_ref[2 * j]) + bb_ref[2 * j], 0.0)
        h2_ref[...] = jnp.maximum(mm(h1, wb_ref[2 * j + 1]) + bb_ref[2 * j + 1], 0.0)
        h_ref[...] = h2_ref[...] + h_ref[...]
        return carry

    lax.fori_loop(0, blocks_per_step, block_body, 0,
                  unroll=True if blocks_per_step <= 4 else False)

    # fc_last + store (last block step only).
    @pl.when(i == n_steps - 1)
    def _():
        out_ref[...] = mm(h_ref[...], wl_ref[...]) + bl_ref[...]


@functools.partial(jax.jit, static_argnames=("block_batch",))
def resnet_orig_forward(x, w0, b0, wb, bb, wl, bl, *, block_batch=512):
    B, d_in = x.shape
    H = w0.shape[1]
    n_blocks = wb.shape[0] // 2
    d_out = wl.shape[1]
    assert n_blocks >= 1 and wb.shape[0] == 2 * n_blocks

    wsize = jnp.dtype(wb.dtype).itemsize
    xsize = jnp.dtype(x.dtype).itemsize

    # Lane-dense output: pad the last layer to a multiple of 128 columns.
    d_out_p = _round_up(max(d_out, 128), 128)
    if d_out_p != d_out:
        wl_p = jnp.zeros((H, d_out_p), wl.dtype).at[:, :d_out].set(wl)
        bl_p = jnp.zeros((1, d_out_p), bl.dtype).at[:, :d_out].set(bl)
    else:
        wl_p, bl_p = wl, bl

    # Batch tiling: multiple of 16 (bf16 sublane packing); when the batch is
    # large, guarantee >= 2 batch tiles so the parallel axis feeds both v7x TCs.
    b16 = _round_up(B, 16)
    bm = min(_round_up(block_batch, 16), b16)
    half = _round_up((b16 + 1) // 2, 16)
    if half >= 256 and bm > half:
        bm = half
    b_pad = _round_up(B, bm)
    x_p = x if b_pad == B else jnp.zeros((b_pad, d_in), x.dtype).at[:B, :].set(x)
    n_batch_tiles = b_pad // bm

    # VMEM planning: pick the largest divisor of n_blocks whose (double-buffered)
    # weight tile fits the budget.  If it equals n_blocks, the block axis is
    # trivial and weights are DMA'd once per call.
    VMEM_TARGET = 44 << 20  # safe under v7x 64 MiB physical, well under v5e/v6e
    fixed = 2 * (bm * d_in * xsize                    # x tile (double-buffered)
                 + d_in * H * wsize + H * 4           # w0, b0
                 + H * d_out_p * wsize + d_out_p * 4  # wl, bl
                 + bm * d_out_p * 4)                  # out tile
    fixed += 2 * bm * H * 4                           # h, h2 scratch
    per_block = 2 * (2 * H * H * wsize + 2 * H * 4)   # double-buffered w + b per block
    block_budget = max(VMEM_TARGET - fixed, per_block)
    bps = 1
    for d in range(1, n_blocks + 1):
        if n_blocks % d == 0 and d * per_block <= block_budget:
            bps = d
    n_steps = n_blocks // bps
    total_vmem = fixed + bps * per_block
    vmem_limit = int(min(max(int(total_vmem * 1.4) + (4 << 20), 32 << 20), 64 << 20))

    grid = (n_batch_tiles, n_steps)

    # Accurate cost estimate: block weights re-stream per batch tile only when
    # the block axis is actually gridded (n_steps > 1).
    flops = 2 * b_pad * (d_in * H + n_blocks * 2 * H * H + H * d_out_p)
    wb_passes = 1 if n_steps == 1 else n_batch_tiles
    bytes_accessed = (
        x_p.size * xsize
        + b_pad * d_out_p * 4
        + w0.size * wsize + b0.size * 4
        + wl_p.size * wsize + bl_p.size * 4
        + wb_passes * (wb.size * wsize + bb.size * 4))

    kernel = functools.partial(resnet_orig_kernel, blocks_per_step=bps)

    out = pl.pallas_call(
        kernel,
        out_shape=jax.ShapeDtypeStruct((b_pad, d_out_p), jnp.float32),
        grid_spec=pltpu.PrefetchScalarGridSpec(
            num_scalar_prefetch=0,
            grid=grid,
            in_specs=[
                pl.BlockSpec((bm, d_in), lambda b, i: (b, 0)),           # x
                pl.BlockSpec((d_in, H), lambda b, i: (0, 0)),            # w0
                pl.BlockSpec((1, H), lambda b, i: (0, 0)),               # b0
                pl.BlockSpec((2 * bps, H, H), lambda b, i: (i, 0, 0)),   # packed block weights
                pl.BlockSpec((2 * bps, 1, H), lambda b, i: (i, 0, 0)),   # packed block biases
                pl.BlockSpec((H, d_out_p), lambda b, i: (0, 0)),         # wl
                pl.BlockSpec((1, d_out_p), lambda b, i: (0, 0)),         # bl
            ],
            out_specs=pl.BlockSpec((bm, d_out_p), lambda b, i: (b, 0)),
            scratch_shapes=[pltpu.VMEM((bm, H), jnp.float32),            # h
                            pltpu.VMEM((bm, H), jnp.float32)],           # h2
        ),
        compiler_params=pltpu.CompilerParams(
            dimension_semantics=("parallel", "arbitrary"),
            vmem_limit_bytes=vmem_limit),
        cost_estimate=pl.CostEstimate(
            flops=int(flops), transcendentals=0,
            bytes_accessed=int(bytes_accessed)),
    )(x_p, w0, b0, wb, bb, wl_p, bl_p)

    return out[:B, :d_out]


def init_params(key, input_dim, hidden_dim, output_dim, hidden_layers,
                weight_dtype=jnp.bfloat16):
    """Deterministic synthetic parameters.  PyTorch-style (out, in) weights are
    transposed to (in, out) and cast to `weight_dtype`; biases stay f32.
    Block weights/biases are packed along a single leading axis:
      wb[2*i]   = layers_1[i],  wb[2*i+1] = layers_2[i]   (2*NB, H, H)
      bb[2*i]   = bias_1[i],    bb[2*i+1] = bias_2[i]     (2*NB, 1, H)
    """
    assert hidden_layers % 2 == 0
    n_blocks = hidden_layers // 2
    keys = jax.random.split(key, 4 + 4 * n_blocks)
    ki = iter(keys)

    def linear(kw, kb, d_in, d_out):
        scale = 1.0 / jnp.sqrt(jnp.float32(d_in))
        w = jax.random.uniform(kw, (d_out, d_in), jnp.float32, -scale, scale)
        b = jax.random.uniform(kb, (d_out,), jnp.float32, -scale, scale)
        return w.T.astype(weight_dtype), b.reshape(1, d_out)

    w0, b0 = linear(next(ki), next(ki), input_dim, hidden_dim)

    ws, bs = [], []
    for _ in range(n_blocks):
        w1, b1 = linear(next(ki), next(ki), hidden_dim, hidden_dim)
        w2, b2 = linear(next(ki), next(ki), hidden_dim, hidden_dim)
        ws += [w1, w2]
        bs += [b1, b2]
    wb = jnp.stack(ws)      # (2*NB, H, H)
    bb = jnp.stack(bs)      # (2*NB, 1, H)

    wl, bl = linear(next(ki), next(ki), hidden_dim, output_dim)
    return w0, b0, wb, bb, wl, bl


def reference_forward(x, w0, b0, wb, bb, wl, bl):
    """Pure-JAX reference mirroring the kernel math (weight-dtype operands,
    f32 accumulation)."""
    def mm(a, w):
        return jnp.dot(a.astype(w.dtype), w, preferred_element_type=jnp.float32)

    h = jax.nn.relu(mm(x, w0) + b0)
    for i in range(wb.shape[0] // 2):
        r = h
        h = jax.nn.relu(mm(h, wb[2 * i]) + bb[2 * i])
        h = jax.nn.relu(mm(h, wb[2 * i + 1]) + bb[2 * i + 1])
        h = h + r
    return mm(h, wl) + bl


if __name__ == "__main__":
    # Small config consistent with the module:
    # input_dim=32, hidden_dim=128, output_dim=16, hidden_layers=4 (=> 2 blocks)
    B, INPUT_DIM, HIDDEN_DIM, OUTPUT_DIM, HIDDEN_LAYERS = 32, 32, 128, 16, 4

    key = jax.random.PRNGKey(0)
    kx, kp = jax.random.split(key)
    x = jax.random.normal(kx, (B, INPUT_DIM), jnp.float32)
    params = init_params(kp, INPUT_DIM, HIDDEN_DIM, OUTPUT_DIM, HIDDEN_LAYERS)

    out = jax.block_until_ready(resnet_orig_forward(x, *params))
    ref = reference_forward(x, *params)

    assert out.shape == (B, OUTPUT_DIM)
    # Kernel and reference use identical weight-dtype / f32-accumulate math.
    assert jnp.allclose(out, ref, atol=2e-3, rtol=2e-3), "mismatch vs reference"

    print("KERNEL_OK")
</pallas_src>

<mosaic_0001>
module attributes {stable_mosaic.version = 11 : i64} {
  func.func @resnet_orig_kernel(%arg0: i32, %arg1: i32, %arg2: memref<32x32xf32, #tpu.memory_space<vmem>>, %arg3: memref<32x128xbf16, #tpu.memory_space<vmem>>, %arg4: memref<1x128xf32, #tpu.memory_space<vmem>>, %arg5: memref<4x128x128xbf16, #tpu.memory_space<vmem>>, %arg6: memref<4x1x128xf32, #tpu.memory_space<vmem>>, %arg7: memref<128x128xbf16, #tpu.memory_space<vmem>>, %arg8: memref<1x128xf32, #tpu.memory_space<vmem>>, %arg9: memref<32x128xf32, #tpu.memory_space<vmem>>, %arg10: memref<32x128xf32, #tpu.memory_space<vmem>>, %arg11: memref<32x128xf32, #tpu.memory_space<vmem>>) attributes {dimension_semantics = [#tpu.dimension_semantics<parallel>, #tpu.dimension_semantics<arbitrary>], iteration_bounds = array<i64: 1, 1>, scalar_prefetch = 0 : i64, scratch_operands = 2 : i64, tpu.core_type = #tpu.core_type<tc>, window_params = [{transform_indices = @transform_0, window_bounds = array<i64: 32, 32>}, {pipeline_mode = #tpu.pipeline_mode<synchronous>, transform_indices = @transform_1, window_bounds = array<i64: 32, 128>}, {pipeline_mode = #tpu.pipeline_mode<synchronous>, transform_indices = @transform_2, window_bounds = array<i64: 1, 128>}, {transform_indices = @transform_3, window_bounds = array<i64: 4, 128, 128>}, {transform_indices = @transform_4, window_bounds = array<i64: 4, 1, 128>}, {pipeline_mode = #tpu.pipeline_mode<synchronous>, transform_indices = @transform_5, window_bounds = array<i64: 128, 128>}, {pipeline_mode = #tpu.pipeline_mode<synchronous>, transform_indices = @transform_6, window_bounds = array<i64: 1, 128>}, {transform_indices = @transform_7, window_bounds = array<i64: 32, 128>}]} {
    %c0_i32 = arith.constant 0 : i32
    %0 = arith.cmpi eq, %arg1, %c0_i32 : i32
    %1 = arith.extui %0 : i1 to i32
    %c0_i32_0 = arith.constant 0 : i32
    %2 = arith.cmpi ne, %1, %c0_i32_0 : i32
    scf.if %2 {
      %c0_58 = arith.constant 0 : index
      %c0_59 = arith.constant 0 : index
      %78 = vector.load %arg2[%c0_58, %c0_59] : memref<32x32xf32, #tpu.memory_space<vmem>>, vector<32x32xf32>
      %c0_60 = arith.constant 0 : index
      %c0_61 = arith.constant 0 : index
      %79 = vector.load %arg3[%c0_60, %c0_61] : memref<32x128xbf16, #tpu.memory_space<vmem>>, vector<32x128xbf16>
      %80 = arith.truncf %78 : vector<32x32xf32> to vector<32x32xbf16>
      %cst_62 = arith.constant dense<0.000000e+00> : vector<32x128xf32>
      %81 = tpu.matmul %80, %79, %cst_62 {dimension_numbers = #tpu.dot_dimension_numbers<[1], [0], [0], [1], [0, 0, 1, 1], [], []>} : vector<32x32xbf16>, vector<32x128xbf16>, vector<32x128xf32> -> vector<32x128xf32>
      %c0_63 = arith.constant 0 : index
      %c0_64 = arith.constant 0 : index
      %82 = vector.load %arg4[%c0_63, %c0_64] : memref<1x128xf32, #tpu.memory_space<vmem>>, vector<1x128xf32>
      %83 = vector.broadcast %82 : vector<1x128xf32> to vector<32x128xf32>
      %84 = arith.addf %81, %83 : vector<32x128xf32>
      %cst_65 = arith.constant 0.000000e+00 : f32
      %85 = vector.broadcast %cst_65 : f32 to vector<32x128xf32>
      %86 = arith.maximumf %84, %85 : vector<32x128xf32>
      %c0_66 = arith.constant 0 : index
      %c0_67 = arith.constant 0 : index
      %87 = vector.load %arg10[%c0_66, %c0_67] : memref<32x128xf32, #tpu.memory_space<vmem>>, vector<32x128xf32>
      tpu.vector_store %arg10[%c0_66, %c0_67], %86 {strides = array<i32>} : memref<32x128xf32, #tpu.memory_space<vmem>>, vector<32x128xf32>,
    } else {
    }
    %c0_i32_1 = arith.constant 0 : i32
    %c0 = arith.constant 0 : index
    %c0_2 = arith.constant 0 : index
    %3 = vector.load %arg10[%c0, %c0_2] : memref<32x128xf32, #tpu.memory_space<vmem>>, vector<32x128xf32>
    %c2_i32 = arith.constant 2 : i32
    %4 = arith.muli %c2_i32, %c0_i32_1 : i32
    %5 = arith.index_cast %4 : i32 to index
    %c0_3 = arith.constant 0 : index
    %c0_4 = arith.constant 0 : index
    %6 = vector.load %arg5[%5, %c0_3, %c0_4] : memref<4x128x128xbf16, #tpu.memory_space<vmem>>, vector<1x128x128xbf16>
    %7 = vector.shape_cast %6 : vector<1x128x128xbf16> to vector<128x128xbf16>
    %8 = arith.truncf %3 : vector<32x128xf32> to vector<32x128xbf16>
    %cst = arith.constant dense<0.000000e+00> : vector<32x128xf32>
    %9 = tpu.matmul %8, %7, %cst {dimension_numbers = #tpu.dot_dimension_numbers<[1], [0], [0], [1], [0, 0, 1, 1], [], []>} : vector<32x128xbf16>, vector<128x128xbf16>, vector<32x128xf32> -> vector<32x128xf32>
    %c2_i32_5 = arith.constant 2 : i32
    %10 = arith.muli %c2_i32_5, %c0_i32_1 : i32
    %11 = arith.index_cast %10 : i32 to index
    %c0_6 = arith.constant 0 : index
    %c0_7 = arith.constant 0 : index
    %12 = vector.load %arg6[%11, %c0_6, %c0_7] : memref<4x1x128xf32, #tpu.memory_space<vmem>>, vector<1x1x128xf32>
    %13 = vector.shape_cast %12 : vector<1x1x128xf32> to vector<1x128xf32>
    %14 = vector.broadcast %13 : vector<1x128xf32> to vector<32x128xf32>
    %15 = arith.addf %9, %14 : vector<32x128xf32>
    %cst_8 = arith.constant 0.000000e+00 : f32
    %16 = vector.broadcast %cst_8 : f32 to vector<32x128xf32>
    %17 = arith.maximumf %15, %16 : vector<32x128xf32>
    %c2_i32_9 = arith.constant 2 : i32
    %18 = arith.muli %c2_i32_9, %c0_i32_1 : i32
    %c1_i32 = arith.constant 1 : i32
    %19 = arith.addi %18, %c1_i32 : i32
    %20 = arith.index_cast %19 : i32 to index
    %c0_10 = arith.constant 0 : index
    %c0_11 = arith.constant 0 : index
    %21 = vector.load %arg5[%20, %c0_10, %c0_11] : memref<4x128x128xbf16, #tpu.memory_space<vmem>>, vector<1x128x128xbf16>
    %22 = vector.shape_cast %21 : vector<1x128x128xbf16> to vector<128x128xbf16>
    %23 = arith.truncf %17 : vector<32x128xf32> to vector<32x128xbf16>
    %cst_12 = arith.constant dense<0.000000e+00> : vector<32x128xf32>
    %24 = tpu.matmul %23, %22, %cst_12 {dimension_numbers = #tpu.dot_dimension_numbers<[1], [0], [0], [1], [0, 0, 1, 1], [], []>} : vector<32x128xbf16>, vector<128x128xbf16>, vector<32x128xf32> -> vector<32x128xf32>
    %c2_i32_13 = arith.constant 2 : i32
    %25 = arith.muli %c2_i32_13, %c0_i32_1 : i32
    %c1_i32_14 = arith.constant 1 : i32
    %26 = arith.addi %25, %c1_i32_14 : i32
    %27 = arith.index_cast %26 : i32 to index
    %c0_15 = arith.constant 0 : index
    %c0_16 = arith.constant 0 : index
    %28 = vector.load %arg6[%27, %c0_15, %c0_16] : memref<4x1x128xf32, #tpu.memory_space<vmem>>, vector<1x1x128xf32>
    %29 = vector.shape_cast %28 : vector<1x1x128xf32> to vector<1x128xf32>
    %30 = vector.broadcast %29 : vector<1x128xf32> to vector<32x128xf32>
    %31 = arith.addf %24, %30 : vector<32x128xf32>
    %cst_17 = arith.constant 0.000000e+00 : f32
    %32 = vector.broadcast %cst_17 : f32 to vector<32x128xf32>
    %33 = arith.maximumf %31, %32 : vector<32x128xf32>
    %c0_18 = arith.constant 0 : index
    %c0_19 = arith.constant 0 : index
    %34 = vector.load %arg11[%c0_18, %c0_19] : memref<32x128xf32, #tpu.memory_space<vmem>>, vector<32x128xf32>
    tpu.vector_store %arg11[%c0_18, %c0_19], %33 {strides = array<i32>} : memref<32x128xf32, #tpu.memory_space<vmem>>, vector<32x128xf32>,
    %c0_20 = arith.constant 0 : index
    %c0_21 = arith.constant 0 : index
    %35 = vector.load %arg11[%c0_20, %c0_21] : memref<32x128xf32, #tpu.memory_space<vmem>>, vector<32x128xf32>
    %c0_22 = arith.constant 0 : index
    %c0_23 = arith.constant 0 : index
    %36 = vector.load %arg10[%c0_22, %c0_23] : memref<32x128xf32, #tpu.memory_space<vmem>>, vector<32x128xf32>
    %37 = arith.addf %35, %36 : vector<32x128xf32>
    %c0_24 = arith.constant 0 : index
    %c0_25 = arith.constant 0 : index
    %38 = vector.load %arg10[%c0_24, %c0_25] : memref<32x128xf32, #tpu.memory_space<vmem>>, vector<32x128xf32>
    tpu.vector_store %arg10[%c0_24, %c0_25], %37 {strides = array<i32>} : memref<32x128xf32, #tpu.memory_space<vmem>>, vector<32x128xf32>,
    %c1_i32_26 = arith.constant 1 : i32
    %c0_27 = arith.constant 0 : index
    %c0_28 = arith.constant 0 : index
    %39 = vector.load %arg10[%c0_27, %c0_28] : memref<32x128xf32, #tpu.memory_space<vmem>>, vector<32x128xf32>
    %c2_i32_29 = arith.constant 2 : i32
    %40 = arith.muli %c2_i32_29, %c1_i32_26 : i32
    %41 = arith.index_cast %40 : i32 to index
    %c0_30 = arith.constant 0 : index
    %c0_31 = arith.constant 0 : index
    %42 = vector.load %arg5[%41, %c0_30, %c0_31] : memref<4x128x128xbf16, #tpu.memory_space<vmem>>, vector<1x128x128xbf16>
    %43 = vector.shape_cast %42 : vector<1x128x128xbf16> to vector<128x128xbf16>
    %44 = arith.truncf %39 : vector<32x128xf32> to vector<32x128xbf16>
    %cst_32 = arith.constant dense<0.000000e+00> : vector<32x128xf32>
    %45 = tpu.matmul %44, %43, %cst_32 {dimension_numbers = #tpu.dot_dimension_numbers<[1], [0], [0], [1], [0, 0, 1, 1], [], []>} : vector<32x128xbf16>, vector<128x128xbf16>, vector<32x128xf32> -> vector<32x128xf32>
    %c2_i32_33 = arith.constant 2 : i32
    %46 = arith.muli %c2_i32_33, %c1_i32_26 : i32
    %47 = arith.index_cast %46 : i32 to index
    %c0_34 = arith.constant 0 : index
    %c0_35 = arith.constant 0 : index
    %48 = vector.load %arg6[%47, %c0_34, %c0_35] : memref<4x1x128xf32, #tpu.memory_space<vmem>>, vector<1x1x128xf32>
    %49 = vector.shape_cast %48 : vector<1x1x128xf32> to vector<1x128xf32>
    %50 = vector.broadcast %49 : vector<1x128xf32> to vector<32x128xf32>
    %51 = arith.addf %45, %50 : vector<32x128xf32>
    %cst_36 = arith.constant 0.000000e+00 : f32
    %52 = vector.broadcast %cst_36 : f32 to vector<32x128xf32>
    %53 = arith.maximumf %51, %52 : vector<32x128xf32>
    %c2_i32_37 = arith.constant 2 : i32
    %54 = arith.muli %c2_i32_37, %c1_i32_26 : i32
    %c1_i32_38 = arith.constant 1 : i32
    %55 = arith.addi %54, %c1_i32_38 : i32
    %56 = arith.index_cast %55 : i32 to index
    %c0_39 = arith.constant 0 : index
    %c0_40 = arith.constant 0 : index
    %57 = vector.load %arg5[%56, %c0_39, %c0_40] : memref<4x128x128xbf16, #tpu.memory_space<vmem>>, vector<1x128x128xbf16>
    %58 = vector.shape_cast %57 : vector<1x128x128xbf16> to vector<128x128xbf16>
    %59 = arith.truncf %53 : vector<32x128xf32> to vector<32x128xbf16>
    %cst_41 = arith.constant dense<0.000000e+00> : vector<32x128xf32>
    %60 = tpu.matmul %59, %58, %cst_41 {dimension_numbers = #tpu.dot_dimension_numbers<[1], [0], [0], [1], [0, 0, 1, 1], [], []>} : vector<32x128xbf16>, vector<128x128xbf16>, vector<32x128xf32> -> vector<32x128xf32>
    %c2_i32_42 = arith.constant 2 : i32
    %61 = arith.muli %c2_i32_42, %c1_i32_26 : i32
    %c1_i32_43 = arith.constant 1 : i32
    %62 = arith.addi %61, %c1_i32_43 : i32
    %63 = arith.index_cast %62 : i32 to index
    %c0_44 = arith.constant 0 : index
    %c0_45 = arith.constant 0 : index
    %64 = vector.load %arg6[%63, %c0_44, %c0_45] : memref<4x1x128xf32, #tpu.memory_space<vmem>>, vector<1x1x128xf32>
    %65 = vector.shape_cast %64 : vector<1x1x128xf32> to vector<1x128xf32>
    %66 = vector.broadcast %65 : vector<1x128xf32> to vector<32x128xf32>
    %67 = arith.addf %60, %66 : vector<32x128xf32>
    %cst_46 = arith.constant 0.000000e+00 : f32
    %68 = vector.broadcast %cst_46 : f32 to vector<32x128xf32>
    %69 = arith.maximumf %67, %68 : vector<32x128xf32>
    %c0_47 = arith.constant 0 : index
    %c0_48 = arith.constant 0 : index
    %70 = vector.load %arg11[%c0_47, %c0_48] : memref<32x128xf32, #tpu.memory_space<vmem>>, vector<32x128xf32>
    tpu.vector_store %arg11[%c0_47, %c0_48], %69 {strides = array<i32>} : memref<32x128xf32, #tpu.memory_space<vmem>>, vector<32x128xf32>,
    %c0_49 = arith.constant 0 : index
    %c0_50 = arith.constant 0 : index
    %71 = vector.load %arg11[%c0_49, %c0_50] : memref<32x128xf32, #tpu.memory_space<vmem>>, vector<32x128xf32>
    %c0_51 = arith.constant 0 : index
    %c0_52 = arith.constant 0 : index
    %72 = vector.load %arg10[%c0_51, %c0_52] : memref<32x128xf32, #tpu.memory_space<vmem>>, vector<32x128xf32>
    %73 = arith.addf %71, %72 : vector<32x128xf32>
    %c0_53 = arith.constant 0 : index
    %c0_54 = arith.constant 0 : index
    %74 = vector.load %arg10[%c0_53, %c0_54] : memref<32x128xf32, #tpu.memory_space<vmem>>, vector<32x128xf32>
    tpu.vector_store %arg10[%c0_53, %c0_54], %73 {strides = array<i32>} : memref<32x128xf32, #tpu.memory_space<vmem>>, vector<32x128xf32>,
    %c2_i32_55 = arith.constant 2 : i32
    %c0_i32_56 = arith.constant 0 : i32
    %75 = arith.cmpi eq, %arg1, %c0_i32_56 : i32
    %76 = arith.extui %75 : i1 to i32
    %c0_i32_57 = arith.constant 0 : i32
    %77 = arith.cmpi ne, %76, %c0_i32_57 : i32
    scf.if %77 {
      %c0_58 = arith.constant 0 : index
      %c0_59 = arith.constant 0 : index
      %78 = vector.load %arg10[%c0_58, %c0_59] : memref<32x128xf32, #tpu.memory_space<vmem>>, vector<32x128xf32>
      %c0_60 = arith.constant 0 : index
      %c0_61 = arith.constant 0 : index
      %79 = vector.load %arg7[%c0_60, %c0_61] : memref<128x128xbf16, #tpu.memory_space<vmem>>, vector<128x128xbf16>
      %80 = arith.truncf %78 : vector<32x128xf32> to vector<32x128xbf16>
      %cst_62 = arith.constant dense<0.000000e+00> : vector<32x128xf32>
      %81 = tpu.matmul %80, %79, %cst_62 {dimension_numbers = #tpu.dot_dimension_numbers<[1], [0], [0], [1], [0, 0, 1, 1], [], []>} : vector<32x128xbf16>, vector<128x128xbf16>, vector<32x128xf32> -> vector<32x128xf32>
      %c0_63 = arith.constant 0 : index
      %c0_64 = arith.constant 0 : index
      %82 = vector.load %arg8[%c0_63, %c0_64] : memref<1x128xf32, #tpu.memory_space<vmem>>, vector<1x128xf32>
      %83 = vector.broadcast %82 : vector<1x128xf32> to vector<32x128xf32>
      %84 = arith.addf %81, %83 : vector<32x128xf32>
      %c0_65 = arith.constant 0 : index
      %c0_66 = arith.constant 0 : index
      %85 = vector.load %arg9[%c0_65, %c0_66] : memref<32x128xf32, #tpu.memory_space<vmem>>, vector<32x128xf32>
      tpu.vector_store %arg9[%c0_65, %c0_66], %84 {strides = array<i32>} : memref<32x128xf32, #tpu.memory_space<vmem>>, vector<32x128xf32>,
    } else {
    }
    return
  }
  func.func @transform_0(%arg0: i32, %arg1: i32) -> (i32, i32) {
    %c0_i32 = arith.constant 0 : i32
    %c0_i32_0 = arith.constant 0 : i32
    return %arg0, %c0_i32 : i32, i32
  }
  func.func @transform_1(%arg0: i32, %arg1: i32) -> (i32, i32) {
    %c0_i32 = arith.constant 0 : i32
    %c0_i32_0 = arith.constant 0 : i32
    %c0_i32_1 = arith.constant 0 : i32
    return %c0_i32, %c0_i32_0 : i32, i32
  }
  func.func @transform_2(%arg0: i32, %arg1: i32) -> (i32, i32) {
    %c0_i32 = arith.constant 0 : i32
    %c0_i32_0 = arith.constant 0 : i32
    %c0_i32_1 = arith.constant 0 : i32
    return %c0_i32, %c0_i32_0 : i32, i32
  }
  func.func @transform_3(%arg0: i32, %arg1: i32) -> (i32, i32, i32) {
    %c0_i32 = arith.constant 0 : i32
    %c0_i32_0 = arith.constant 0 : i32
    %c0_i32_1 = arith.constant 0 : i32
    return %arg1, %c0_i32, %c0_i32_0 : i32, i32, i32
  }
  func.func @transform_4(%arg0: i32, %arg1: i32) -> (i32, i32, i32) {
    %c0_i32 = arith.constant 0 : i32
    %c0_i32_0 = arith.constant 0 : i32
    %c0_i32_1 = arith.constant 0 : i32
    return %arg1, %c0_i32, %c0_i32_0 : i32, i32, i32
  }
  func.func @transform_5(%arg0: i32, %arg1: i32) -> (i32, i32) {
    %c0_i32 = arith.constant 0 : i32
    %c0_i32_0 = arith.constant 0 : i32
    %c0_i32_1 = arith.constant 0 : i32
    return %c0_i32, %c0_i32_0 : i32, i32
  }
  func.func @transform_6(%arg0: i32, %arg1: i32) -> (i32, i32) {
    %c0_i32 = arith.constant 0 : i32
    %c0_i32_0 = arith.constant 0 : i32
    %c0_i32_1 = arith.constant 0 : i32
    return %c0_i32, %c0_i32_0 : i32, i32
  }
  func.func @transform_7(%arg0: i32, %arg1: i32) -> (i32, i32) {
    %c0_i32 = arith.constant 0 : i32
    %c0_i32_0 = arith.constant 0 : i32
    return %arg0, %c0_i32 : i32, i32
  }
}

</mosaic_0001>

<bundles_post_ra>
// kernel: resnet_orig_forward.1
= control target key start
LH: loop header
LB: loop body
LE: loop exit
PB: predicated region body
PF: predicated region fallthrough
CT: control target
= control target key end

     0   :  { %vm60_vm0 = vcmask 261120   ;;  %s1376_s1 = inlined_call_operand.vmem [shape: bf16[32,128], index: 1, kind: input, shape index: {}]   ;;  %s1377_s0 = inlined_call_operand.vmem [shape: f32[32,32], index: 0, kind: input, shape index: {}]   ;;  %s1378_s3 = inlined_call_operand.vmem [shape: bf16[4,128,128], index: 3, kind: input, shape index: {}]   ;;  %s1379_s2 = inlined_call_operand.vmem [shape: f32[1,128], index: 2, kind: input, shape index: {}]   ;;  %s1380_s4 = inlined_call_operand.vmem [shape: f32[4,1,128], index: 4, kind: input, shape index: {}]   ;;  %s1381_s5 = inlined_call_operand.vmem [shape: bf16[128,128], index: 5, kind: input, shape index: {}]   ;;  %s1382_s6 = inlined_call_operand.vmem [shape: f32[1,128], index: 6, kind: input, shape index: {}]   ;;  %s1383_s7 = inlined_call_operand.vmem [shape: f32[32,128], index: 7, kind: output, shape index: {}]  }
   0x1   :  { %v1082_v0 = vld [vmem:[%s1376_s1 + $0x8] sm:$0xff]   ;;  %v1083_v1 = vld [vmem:[%s1376_s1] sm:$0xff]   ;;  %v33_v4 = vld [vmem:[%s1377_s0 + $0x10] sm:$0xff] }
   0x2   :  { %974 = vmatprep.subr.bf16.mxu0 %v1082_v0  ;;  %v31_v2 = vld [vmem:[%s1377_s0] sm:$0xff]  ;;  %v32_v3 = vld [vmem:[%s1377_s0 + $0x8] sm:$0xff]  ;;  %v34_v6 = vld [vmem:[%s1377_s0 + $0x18] sm:$0xff] }
   0x3   :  { %975 = vmatpush3.bf16.msra.mxu0 %v1082_v0  ;;  %v39_v5 = vpack.c.bf16 %v32_v3, %v31_v2  ;;  %v1084_v7 = vld [vmem:[%s1378_s3 + $0x38] sm:$0xff]   ;;  %v1085_v8 = vld [vmem:[%s1378_s3 + $0x30] sm:$0xff]   ;;  %v40_v9 = vpack.c.bf16 %v34_v6, %v33_v4  ;;  %v1086_v10 = vld [vmem:[%s1378_s3 + $0x28] sm:$0xff]  }
   0x4   :  { %976 = vmatprep.subr.bf16.mxu0 %v1083_v1  ;;  %982 = vmatprep.subr.bf16.mxu1 %v1084_v7  ;;  %v1087_v11 = vld [vmem:[%s1378_s3 + $0x20] sm:$0xff]   ;;  %v1088_v12 = vld [vmem:[%s1378_s3 + $0x18] sm:$0xff]   ;;  %v1089_v13 = vld [vmem:[%s1378_s3 + $0x10] sm:$0xff]  }
   0x5   :  { %978 = vmatprep.mubr.msk.bf16.mxu0 %vm60_vm0, %v39_v5  ;;  %983 = vmatpush3.bf16.msra.mxu1 %v1084_v7  ;;  %v1090_v14 = vld [vmem:[%s1378_s3 + $0x8] sm:$0xff]   ;;  %v1091_v15 = vld [vmem:[%s1378_s3] sm:$0xff]   ;;  %v1092_v16 = vld [vmem:[%s1378_s3 + $0x78] sm:$0xff]  }
   0x6   :  { %984 = vmatprep.subr.bf16.mxu1 %v1085_v8  ;;  %v1093_v17 = vld [vmem:[%s1378_s3 + $0x70] sm:$0xff]   ;;  %v1094_v18 = vld [vmem:[%s1378_s3 + $0x68] sm:$0xff]   ;;  %v1095_v19 = vld [vmem:[%s1378_s3 + $0x60] sm:$0xff]  }
   0x7   :  { %977 = vmatpush3.bf16.msra.mxu0 %v1083_v1  ;;  %v1096_v20 = vld [vmem:[%s1378_s3 + $0x58] sm:$0xff]   ;;  %v819_v23 = vld [vmem:[%s1379_s2] ss:$0 sm:$0xff]  ;;  %v1097_v36 = vld [vmem:[%s1378_s3 + $0x50] sm:$0xff]  }
   0x8   :  { %1002 = vmatprep.subr.bf16.mxu0 %v1092_v16  ;;  %v1098_v37 = vld [vmem:[%s1378_s3 + $0x48] sm:$0xff]   ;;  %v1099_v38 = vld [vmem:[%s1378_s3 + $0x40] sm:$0xff]   ;;  %v1100_v39 = vld [vmem:[%s1378_s3 + $0xb8] sm:$0xff]  }
   0x9   :  { %985 = vmatpush3.bf16.msra.mxu1 %v1085_v8  ;;  %v1101_v40 = vld [vmem:[%s1378_s3 + $0xb0] sm:$0xff]   ;;  %v1102_v41 = vld [vmem:[%s1378_s3 + $0xa8] sm:$0xff]   ;;  %v1103_v42 = vld [vmem:[%s1378_s3 + $0xa0] sm:$0xff]  }
   0xa   :  { %979 = vmatmul.mubr.msk.bf16.vlgmr.msra.gmra.mxu0 %vm60_vm0, %v40_v9  ;;  %986 = vmatprep.subr.bf16.mxu1 %v1086_v10  ;;  %v824_v45 = vld [vmem:[%s1380_s4] ss:$0 sm:$0xff]  ;;  %v1104_v58 = vld [vmem:[%s1378_s3 + $0x98] sm:$0xff]   ;;  %v1105_v59 = vld [vmem:[%s1378_s3 + $0x90] sm:$0xff]  }
   0xb   :  { %1003 = vmatpush3.bf16.msra.mxu0 %v1092_v16  ;;  %v1106_v60 = vld [vmem:[%s1378_s3 + $0x88] sm:$0xff]   ;;  %v1107_v61 = vld [vmem:[%s1378_s3 + $0x80] sm:$0xff]   ;;  %v1108_v62 = vld [vmem:[%s1378_s3 + $0xf8] sm:$0xff]  }
   0xc   :  { %1004 = vmatprep.subr.bf16.mxu0 %v1093_v17  ;;  %v1109_v63 = vld [vmem:[%s1378_s3 + $0xf0] sm:$0xff]   ;;  %v1110_v0 = vld [vmem:[%s1378_s3 + $0xe8] sm:$0xff]   ;;  %v1111_v1 = vld [vmem:[%s1378_s3 + $0xe0] sm:$0xff]  }
   0xd   :  { %987 = vmatpush3.bf16.msra.mxu1 %v1086_v10  ;;  %v1112_v2 = vld [vmem:[%s1378_s3 + $0xd8] sm:$0xff]   ;;  %v850_v4 = vld [vmem:[%s1380_s4 + $0x1] ss:$0 sm:$0xff] }
   0xe   :  { %988 = vmatprep.subr.bf16.mxu1 %v1087_v11 }
   0xf   :  { %1005 = vmatpush3.bf16.msra.mxu0 %v1093_v17 }
  0x10   :  { %1006 = vmatprep.subr.bf16.mxu0 %v1094_v18 }
  0x11   :  { %989 = vmatpush3.bf16.msra.mxu1 %v1087_v11 }
  0x12   :  { %990 = vmatprep.subr.bf16.mxu1 %v1088_v12 }
  0x13   :  { %1007 = vmatpush3.bf16.msra.mxu0 %v1094_v18 }
  0x14   :  { %1008 = vmatprep.subr.bf16.mxu0 %v1095_v19 }
  0x15   :  { %991 = vmatpush3.bf16.msra.mxu1 %v1088_v12 }
  0x16   :  { %992 = vmatprep.subr.bf16.mxu1 %v1089_v13 }
  0x17   :  { %1009 = vmatpush3.bf16.msra.mxu0 %v1095_v19 }
  0x18   :  { %1010 = vmatprep.subr.bf16.mxu0 %v1096_v20 }
  0x19   :  { %993 = vmatpush3.bf16.msra.mxu1 %v1089_v13 }
  0x1a   :  { %994 = vmatprep.subr.bf16.mxu1 %v1090_v14 }
  0x1b   :  { %1011 = vmatpush3.bf16.msra.mxu0 %v1096_v20 }
  0x1c   :  { %1012 = vmatprep.subr.bf16.mxu0 %v1097_v36 }
  0x1d   :  { %995 = vmatpush3.bf16.msra.mxu1 %v1090_v14 }
  0x1e   :  { %996 = vmatprep.subr.bf16.mxu1 %v1091_v15 }
  0x1f   :  { %1013 = vmatpush3.bf16.msra.mxu0 %v1097_v36 }
  0x20   :  { %1014 = vmatprep.subr.bf16.mxu0 %v1098_v37 }
  0x21   :  { %997 = vmatpush3.bf16.msra.mxu1 %v1091_v15 }
  0x22   :  { %1022 = vmatprep.subr.bf16.mxu1 %v1100_v39 }
  0x23   :  { %1015 = vmatpush3.bf16.msra.mxu0 %v1098_v37 }
  0x24   :  { %1016 = vmatprep.subr.bf16.mxu0 %v1099_v38 }
  0x27   :  { %1017 = vmatpush3.bf16.msra.mxu0 %v1099_v38 }
  0x28   :  { %1042 = vmatprep.subr.bf16.mxu0 %v1108_v62 }
  0xca   :  { %v980_v21 = vpop.f32.mrf.mxu0 }
  0xcb   :  { %v1228_v27 = vadd.f32 %v980_v21, %v819_v23 }
  0xcc   :  { %v101_v22 = vpop.f32.mrf.mxu0 }
  0xcd   :  { %v1224_v25 = vadd.f32 %v819_v23, %v101_v22  ;;  %v118_v33 = vmax.f32 %v1228_v27, 0.0  ;;  %v1113_v22 = vld [vmem:[%s1378_s3 + $0xd0] sm:$0xff]   ;;  %v1118_v27 = vld [vmem:[%s1381_s5 + $0x28] sm:$0xff]  }
  0xce   :  { %v981_v24 = vpop.f32.mrf.mxu0 }
  0xcf   :  { %v1226_v26 = vadd.f32 %v981_v24, %v819_v23  ;;  %v116_v31 = vmax.f32 %v1224_v25, 0.0  ;;  %v1115_v24 = vld [vmem:[%s1378_s3 + $0xc0] sm:$0xff]   ;;  %v1116_v25 = vld [vmem:[%s1381_s5 + $0x38] sm:$0xff]  }
  0xd0   :  { %v104_v28 = vpop.f32.mrf.mxu0 }
  0xd1   :  { %v1230_v29 = vadd.f32 %v819_v23, %v104_v28  ;;  %v119_v30 = vmax.f32 %v1226_v26, 0.0  ;;  %v1114_v23 = vld [vmem:[%s1378_s3 + $0xc8] sm:$0xff]   ;;  %v1117_v26 = vld [vmem:[%s1381_s5 + $0x30] sm:$0xff]   ;;  %v1119_v28 = vld [vmem:[%s1381_s5 + $0x20] sm:$0xff]  }
  0xd3   :  { %v117_v32 = vmax.f32 %v1230_v29, 0.0  ;;  %v145_v35 = vpack.c.bf16 %v119_v30, %v118_v33 }
  0xd5   :  { %v144_v34 = vpack.c.bf16 %v117_v32, %v116_v31 }
  0xd7   :  { %998 = vmatprep.mubr.bf16.mxu1 %v144_v34 }
  0xd8   :  { %999 = vmatmul.mubr.bf16.vlgmr.msra.gmra.mxu1 %v145_v35 }
  0xd9   :  { %1023 = vmatpush3.bf16.msra.mxu1 %v1100_v39 }
  0xda   :  { %1024 = vmatprep.subr.bf16.mxu1 %v1101_v40 }
  0xdd   :  { %1025 = vmatpush3.bf16.msra.mxu1 %v1101_v40 }
  0xde   :  { %1026 = vmatprep.subr.bf16.mxu1 %v1102_v41 }
  0xe1   :  { %1027 = vmatpush3.bf16.msra.mxu1 %v1102_v41 }
  0xe2   :  { %1028 = vmatprep.subr.bf16.mxu1 %v1103_v42 }
  0xe5   :  { %1029 = vmatpush3.bf16.msra.mxu1 %v1103_v42 }
  0xe6   :  { %1030 = vmatprep.subr.bf16.mxu1 %v1104_v58 }
  0xe9   :  { %1031 = vmatpush3.bf16.msra.mxu1 %v1104_v58 }
  0xea   :  { %1032 = vmatprep.subr.bf16.mxu1 %v1105_v59 }
  0xed   :  { %1033 = vmatpush3.bf16.msra.mxu1 %v1105_v59 }
  0xee   :  { %1034 = vmatprep.subr.bf16.mxu1 %v1106_v60 }
  0xf1   :  { %1035 = vmatpush3.bf16.msra.mxu1 %v1106_v60 }
  0xf2   :  { %1036 = vmatprep.subr.bf16.mxu1 %v1107_v61 }
  0xf5   :  { %1037 = vmatpush3.bf16.msra.mxu1 %v1107_v61 }
  0xf6   :  { %1062 = vmatprep.subr.bf16.mxu1 %v1116_v25 }
 0x198   :  { %v1000_v43 = vpop.f32.mrf.mxu1 }
 0x199   :  { %v244_v49 = vadd.f32 %v1000_v43, %v824_v45 }
 0x19a   :  { %v235_v44 = vpop.f32.mrf.mxu1 }
 0x19b   :  { %v236_v47 = vadd.f32 %v824_v45, %v235_v44  ;;  %v252_v55 = vmax.f32 %v244_v49, 0.0  ;;  %v1120_v44 = vld [vmem:[%s1381_s5 + $0x18] sm:$0xff]   ;;  %v902_v49 = vld [vmem:[%s1380_s4 + $0x3] ss:$0 sm:$0xff] }
 0x19c   :  { %v1001_v46 = vpop.f32.mrf.mxu1 }
 0x19d   :  { %v247_v48 = vadd.f32 %v1001_v46, %v824_v45  ;;  %v250_v53 = vmax.f32 %v236_v47, 0.0  ;;  %v1122_v46 = vld [vmem:[%s1381_s5 + $0x8] sm:$0xff]   ;;  %v1123_v47 = vld [vmem:[%s1381_s5] sm:$0xff]  }
 0x19e   :  { %v238_v50 = vpop.f32.mrf.mxu1 }
 0x19f   :  { %v239_v51 = vadd.f32 %v824_v45, %v238_v50  ;;  %v253_v52 = vmax.f32 %v247_v48, 0.0  ;;  %v1121_v45 = vld [vmem:[%s1381_s5 + $0x10] sm:$0xff]  }
 0x1a1   :  { %v251_v54 = vmax.f32 %v239_v51, 0.0  ;;  %v272_v57 = vpack.c.bf16 %v253_v52, %v252_v55 }
 0x1a3   :  { %v271_v56 = vpack.c.bf16 %v251_v54, %v250_v53 }
 0x1a5   :  { %1018 = vmatprep.mubr.bf16.mxu0 %v271_v56 }
 0x1a6   :  { %1019 = vmatmul.mubr.bf16.vlgmr.msra.gmra.mxu0 %v272_v57 }
 0x1a7   :  { %1043 = vmatpush3.bf16.msra.mxu0 %v1108_v62 }
 0x1a8   :  { %1044 = vmatprep.subr.bf16.mxu0 %v1109_v63 }
 0x1ab   :  { %1045 = vmatpush3.bf16.msra.mxu0 %v1109_v63 }
 0x1ac   :  { %1046 = vmatprep.subr.bf16.mxu0 %v1110_v0 }
 0x1af   :  { %1047 = vmatpush3.bf16.msra.mxu0 %v1110_v0 }
 0x1b0   :  { %1048 = vmatprep.subr.bf16.mxu0 %v1111_v1 }
 0x1b3   :  { %1049 = vmatpush3.bf16.msra.mxu0 %v1111_v1 }
 0x1b4   :  { %1050 = vmatprep.subr.bf16.mxu0 %v1112_v2 }
 0x1b7   :  { %1051 = vmatpush3.bf16.msra.mxu0 %v1112_v2 }
 0x1b8   :  { %1052 = vmatprep.subr.bf16.mxu0 %v1113_v22 }
 0x1bb   :  { %1053 = vmatpush3.bf16.msra.mxu0 %v1113_v22 }
 0x1bc   :  { %1054 = vmatprep.subr.bf16.mxu0 %v1114_v23 }
 0x1bf   :  { %1055 = vmatpush3.bf16.msra.mxu0 %v1114_v23 }
 0x1c0   :  { %1056 = vmatprep.subr.bf16.mxu0 %v1115_v24 }
 0x1c3   :  { %1057 = vmatpush3.bf16.msra.mxu0 %v1115_v24 }
 0x266   :  { %v1020_v3 = vpop.f32.mrf.mxu0 }
 0x267   :  { %v372_v7 = vadd.f32 %v1020_v3, %v850_v4  ;;  %v911_v3 = vld [vmem:[%s1382_s6] ss:$0 sm:$0xff] }
 0x268   :  { %v363_v5 = vpop.f32.mrf.mxu0 }
 0x269   :  { %v364_v6 = vadd.f32 %v850_v4, %v363_v5  ;;  %v380_v14 = vmax.f32 %v372_v7, 0.0 }
 0x26a   :  { %v1021_v8 = vpop.f32.mrf.mxu0 }
 0x26b   :  { %v375_v9 = vadd.f32 %v1021_v8, %v850_v4  ;;  %v378_v11 = vmax.f32 %v364_v6, 0.0  ;;  %v1312_v19 = vadd.f32 %v380_v14, %v118_v33 }
 0x26c   :  { %v366_v10 = vpop.f32.mrf.mxu0 }
 0x26d   :  { %v381_v12 = vmax.f32 %v375_v9, 0.0  ;;  %v367_v13 = vadd.f32 %v850_v4, %v366_v10  ;;  %v1304_v17 = vadd.f32 %v378_v11, %v116_v31  ;;  %v876_v31 = vld [vmem:[%s1380_s4 + $0x2] ss:$0 sm:$0xff] }
 0x26f   :  { %v379_v15 = vmax.f32 %v367_v13, 0.0  ;;  %v1300_v16 = vadd.f32 %v381_v12, %v119_v30 }
 0x271   :  { %v1308_v18 = vadd.f32 %v379_v15, %v117_v32  ;;  %v424_v21 = vpack.c.bf16 %v1300_v16, %v1312_v19 }
 0x273   :  { %v423_v20 = vpack.c.bf16 %v1308_v18, %v1304_v17 }
 0x275   :  { %1038 = vmatprep.mubr.bf16.mxu1 %v423_v20 }
 0x276   :  { %1039 = vmatmul.mubr.bf16.vlgmr.msra.gmra.mxu1 %v424_v21 }
 0x277   :  { %1063 = vmatpush3.bf16.msra.mxu1 %v1116_v25 }
 0x278   :  { %1064 = vmatprep.subr.bf16.mxu1 %v1117_v26 }
 0x27b   :  { %1065 = vmatpush3.bf16.msra.mxu1 %v1117_v26 }
 0x27c   :  { %1066 = vmatprep.subr.bf16.mxu1 %v1118_v27 }
 0x27f   :  { %1067 = vmatpush3.bf16.msra.mxu1 %v1118_v27 }
 0x280   :  { %1068 = vmatprep.subr.bf16.mxu1 %v1119_v28 }
 0x283   :  { %1069 = vmatpush3.bf16.msra.mxu1 %v1119_v28 }
 0x284   :  { %1070 = vmatprep.subr.bf16.mxu1 %v1120_v44 }
 0x287   :  { %1071 = vmatpush3.bf16.msra.mxu1 %v1120_v44 }
 0x288   :  { %1072 = vmatprep.subr.bf16.mxu1 %v1121_v45 }
 0x28b   :  { %1073 = vmatpush3.bf16.msra.mxu1 %v1121_v45 }
 0x28c   :  { %1074 = vmatprep.subr.bf16.mxu1 %v1122_v46 }
 0x28f   :  { %1075 = vmatpush3.bf16.msra.mxu1 %v1122_v46 }
 0x290   :  { %1076 = vmatprep.subr.bf16.mxu1 %v1123_v47 }
 0x293   :  { %1077 = vmatpush3.bf16.msra.mxu1 %v1123_v47 }
 0x336   :  { %v1040_v29 = vpop.f32.mrf.mxu1 }
 0x337   :  { %v524_v35 = vadd.f32 %v1040_v29, %v876_v31 }
 0x338   :  { %v515_v30 = vpop.f32.mrf.mxu1 }
 0x339   :  { %v516_v33 = vadd.f32 %v876_v31, %v515_v30  ;;  %v532_v41 = vmax.f32 %v524_v35, 0.0 }
 0x33a   :  { %v1041_v32 = vpop.f32.mrf.mxu1 }
 0x33b   :  { %v527_v34 = vadd.f32 %v1041_v32, %v876_v31  ;;  %v530_v39 = vmax.f32 %v516_v33, 0.0 }
 0x33c   :  { %v518_v36 = vpop.f32.mrf.mxu1 }
 0x33d   :  { %v519_v37 = vadd.f32 %v876_v31, %v518_v36  ;;  %v533_v38 = vmax.f32 %v527_v34, 0.0 }
 0x33f   :  { %v531_v40 = vmax.f32 %v519_v37, 0.0  ;;  %v552_v43 = vpack.c.bf16 %v533_v38, %v532_v41 }
 0x341   :  { %v551_v42 = vpack.c.bf16 %v531_v40, %v530_v39 }
 0x343   :  { %1058 = vmatprep.mubr.bf16.mxu0 %v551_v42 }
 0x344   :  { %1059 = vmatmul.mubr.bf16.vlgmr.msra.gmra.mxu0 %v552_v43 }
 0x404   :  { %v1060_v48 = vpop.f32.mrf.mxu0 }
 0x405   :  { %v652_v52 = vadd.f32 %v1060_v48, %v902_v49 }
 0x406   :  { %v643_v50 = vpop.f32.mrf.mxu0 }
 0x407   :  { %v644_v51 = vadd.f32 %v902_v49, %v643_v50  ;;  %v660_v59 = vmax.f32 %v652_v52, 0.0 }
 0x408   :  { %v1061_v53 = vpop.f32.mrf.mxu0 }
 0x409   :  { %v655_v54 = vadd.f32 %v1061_v53, %v902_v49  ;;  %v658_v56 = vmax.f32 %v644_v51, 0.0  ;;  %v676_v0 = vadd.f32 %v660_v59, %v1312_v19 }
 0x40a   :  { %v646_v55 = vpop.f32.mrf.mxu0 }
 0x40b   :  { %v661_v57 = vmax.f32 %v655_v54, 0.0  ;;  %v647_v58 = vadd.f32 %v902_v49, %v646_v55  ;;  %v674_v62 = vadd.f32 %v658_v56, %v1304_v17 }
 0x40d   :  { %v659_v60 = vmax.f32 %v647_v58, 0.0  ;;  %v677_v61 = vadd.f32 %v661_v57, %v1300_v16 }
 0x40f   :  { %v675_v63 = vadd.f32 %v659_v60, %v1308_v18  ;;  %v706_v2 = vpack.c.bf16 %v677_v61, %v676_v0 }
 0x411   :  { %v705_v1 = vpack.c.bf16 %v675_v63, %v674_v62 }
 0x413   :  { %1078 = vmatprep.mubr.bf16.mxu1 %v705_v1 }
 0x414   :  { %1079 = vmatmul.mubr.bf16.vlgmr.msra.gmra.mxu1 %v706_v2 }
 0x4d4   :  { %v1080_v4 = vpop.f32.mrf.mxu1 }
 0x4d5   :  { %v805_v5 = vadd.f32 %v1080_v4, %v911_v3 }
 0x4d6   :  { %v796_v6 = vpop.f32.mrf.mxu1 }
 0x4d7   :  { %813 = vst [vmem:[%s1383_s7 + $0x10] sm:$0xff] %v805_v5  ;;  %v797_v7 = vadd.f32 %v911_v3, %v796_v6 }
 0x4d8   :  { %v1081_v8 = vpop.f32.mrf.mxu1 }
 0x4d9   :  { %811 = vst [vmem:[%s1383_s7] sm:$0xff] %v797_v7  ;;  %v808_v9 = vadd.f32 %v1081_v8, %v911_v3 }
 0x4da   :  { %v799_v10 = vpop.f32.mrf.mxu1 }
 0x4db   :  { %814 = vst [vmem:[%s1383_s7 + $0x18] sm:$0xff] %v808_v9  ;;  %v800_v11 = vadd.f32 %v911_v3, %v799_v10 }
 0x4dd   :  { %812 = vst [vmem:[%s1383_s7 + $0x8] sm:$0xff] %v800_v11 }

</bundles_post_ra>
